<compile_context>
chip_gen: v7x
topology: tpu7x:2x2x1
jax: 0.10.0
libtpu: 0.0.40
codegen_flags: <defaults>
</compile_context>

<pallas_src>
import math

import jax
import jax.numpy as jnp
from jax.experimental import pallas as pl
from jax.experimental.pallas import tpu as pltpu


_SUBLANE = 8      # row-tile granularity (second-to-last dim)
_MXU_M = 256      # v6e/v7x MXU M dimension


def _cdiv(a, b):
    return -(-a // b)


def _round_up(x, m):
    return _cdiv(x, m) * m


def _hw_params():
    """Returns (vmem_limit_bytes, num_tensorcores) with conservative fallbacks."""
    kind = ""
    try:
        kind = jax.devices()[0].device_kind.lower()
    except Exception:
        pass
    info = None
    try:
        info = pltpu.get_tpu_info()
    except Exception:
        info = None

    vmem_cap = getattr(info, "vmem_capacity_bytes", None) if info is not None else None
    if not vmem_cap:
        vmem_cap = (64 << 20) if ("v7" in kind or "7x" in kind) else (128 << 20)
    # ~48 MiB scoped limit on 128 MiB parts (v5e/v6e), ~40 MiB on 64 MiB parts (v7x).
    vmem_limit = min(48 << 20, (int(vmem_cap) * 5) // 8)

    num_cores = 0
    if info is not None:
        for attr in ("tensorcores_per_chip", "num_tensorcores",
                     "cores_per_chip", "num_cores"):
            v = getattr(info, attr, None)
            if v:
                num_cores = int(v)
                break
    if num_cores <= 0:
        num_cores = 2 if ("v7" in kind or "7x" in kind) else 1
    return vmem_limit, num_cores


def _choose_tile_n(n_rows, in_d, hid_d, out_d, x_bytes, out_bytes,
                   vmem_limit, num_cores):
    """Largest multiple-of-8 row tile fitting the VMEM budget; 256-aligned when large."""
    n8 = _round_up(max(n_rows, 1), _SUBLANE)

    # Resident, single-buffered (constant index_map): bf16 weights + f32 biases.
    fixed = (in_d * hid_d + hid_d * out_d) * 2 + (hid_d + out_d) * 4
    # Per row of the tile:
    #   x : double-buffered in its HBM dtype + one bf16 cast copy
    #   h : f32 intermediate + its bf16 cast copy (Mosaic internal scratch)
    #   y : f32 result + double-buffered out tile in the output dtype
    per_row = (2 * x_bytes + 2) * in_d + (4 + 2) * hid_d + (4 + 2 * out_bytes) * out_d

    budget = (vmem_limit * 3) // 4 - fixed        # 25% headroom for vregs / scratch
    if budget < per_row * _SUBLANE:
        # TODO(synk): weights (or even a minimal row tile) exceed the VMEM budget;
        # a hidden-dim-chunked / K-tiled accumulator variant is required here.
        return _SUBLANE

    tile_cap = min((budget // per_row) // _SUBLANE * _SUBLANE, 2048)
    if tile_cap >= _MXU_M:
        tile_cap = (tile_cap // _MXU_M) * _MXU_M  # full MXU M-fill when affordable

    if n8 <= tile_cap:
        if num_cores <= 1 or n8 <= _SUBLANE:
            return n8                             # single sequential step on 1-TC chips
        # Split so every TensorCore gets work under dimension_semantics=("parallel",).
        return max(_SUBLANE, _round_up(_cdiv(n8, num_cores), _SUBLANE))

    steps = _cdiv(n8, tile_cap)
    if num_cores > 1:
        steps = _round_up(steps, num_cores)       # balanced TC0/TC1 load
    align = _MXU_M if tile_cap >= _MXU_M else _SUBLANE
    return min(tile_cap, _round_up(_cdiv(n8, steps), align))


def _ffn_kernel(x_ref, w1_ref, b1_ref, w2_ref, b2_ref, o_ref):
    # x_ref : (tile_n, in_d)  x.dtype      w1_ref: (in_d, hid_d)   bf16
    # b1_ref: (1, hid_d)      f32          w2_ref: (hid_d, out_d)  bf16
    # b2_ref: (1, out_d)      f32          o_ref : (tile_n, out_d) x.dtype
    x = x_ref[...].astype(jnp.bfloat16)           # in-kernel cast: VPU filler under MXU slack
    h = jnp.dot(x, w1_ref[...], preferred_element_type=jnp.float32)
    h = jnp.maximum(h + b1_ref[...], 0.0)         # bias + ReLU in f32 (VPU)
    y = jnp.dot(h.astype(jnp.bfloat16), w2_ref[...],
                preferred_element_type=jnp.float32)
    o_ref[...] = (y + b2_ref[...]).astype(o_ref.dtype)


def nodewise_feedforward(x, w1, b1, w2, b2):
    """y = relu(x @ w1.T + b1) @ w2.T + b2, with PyTorch nn.Linear weight layout.

    x: [N, input_dim]; w1: [hidden, input]; b1: [hidden]; w2: [output, hidden]; b2: [output]
    """
    n, input_dim = x.shape
    hidden_dim = w1.shape[0]
    output_dim = w2.shape[0]

    vmem_limit, num_cores = _hw_params()
    tile_n = _choose_tile_n(n, input_dim, hidden_dim, output_dim,
                            x.dtype.itemsize, x.dtype.itemsize,
                            vmem_limit, num_cores)
    grid = (_cdiv(n, tile_n),)

    # One-time small passes over the (small) weights: transpose to matmul layout and
    # cast to bf16 for the MXU; biases stay f32 for the bias-add.
    w1t = w1.T.astype(jnp.bfloat16)                       # (in, hid)
    w2t = w2.T.astype(jnp.bfloat16)                       # (hid, out)
    b1r = b1.reshape(1, hidden_dim).astype(jnp.float32)
    b2r = b2.reshape(1, output_dim).astype(jnp.float32)

    flops = 2 * n * (input_dim * hidden_dim + hidden_dim * output_dim)
    bytes_accessed = (x.size * x.dtype.itemsize
                      + w1t.size * 2 + w2t.size * 2
                      + (b1r.size + b2r.size) * 4
                      + n * output_dim * x.dtype.itemsize)

    resident = pl.Buffered(1)   # constant block index -> keep single-buffered in VMEM

    return pl.pallas_call(
        _ffn_kernel,
        out_shape=jax.ShapeDtypeStruct((n, output_dim), x.dtype),
        grid_spec=pltpu.PrefetchScalarGridSpec(
            num_scalar_prefetch=0,
            grid=grid,
            in_specs=[
                # x: row-tiled; last dim equals the full array dim -> legal, no
                # wrapper-side pad/cast HBM pass. Ragged N handled by partial blocks.
                pl.BlockSpec((tile_n, input_dim), lambda i: (i, 0)),
                # weights / biases: whole arrays, resident & single-buffered.
                pl.BlockSpec((input_dim, hidden_dim), lambda i: (0, 0),
                             pipeline_mode=resident),
                pl.BlockSpec((1, hidden_dim), lambda i: (0, 0),
                             pipeline_mode=resident),
                pl.BlockSpec((hidden_dim, output_dim), lambda i: (0, 0),
                             pipeline_mode=resident),
                pl.BlockSpec((1, output_dim), lambda i: (0, 0),
                             pipeline_mode=resident),
            ],
            out_specs=pl.BlockSpec((tile_n, output_dim), lambda i: (i, 0)),
        ),
        compiler_params=pltpu.CompilerParams(
            dimension_semantics=("parallel",),
            vmem_limit_bytes=vmem_limit,
        ),
        cost_estimate=pl.CostEstimate(
            flops=flops, transcendentals=0, bytes_accessed=bytes_accessed),
    )(x, w1t, b1r, w2t, b2r)


def _reference(x, w1, b1, w2, b2):
    h = jnp.maximum(x @ w1.T + b1, 0.0)
    return h @ w2.T + b2


if __name__ == "__main__":
    input_dim, hidden_dim, output_dim = 16, 32, 16

    key = jax.random.PRNGKey(0)
    kx, kw1, kb1, kw2, kb2, kx2 = jax.random.split(key, 6)

    # Deterministic init mirroring the module:
    #   weights ~ U[0, 1)  (nn.init.uniform_(w, a=0, b=1))
    #   biases  ~ U[-1/sqrt(fan_in), 1/sqrt(fan_in)]  (PyTorch Linear default)
    w1 = jax.random.uniform(kw1, (hidden_dim, input_dim), minval=0.0, maxval=1.0)
    b1 = jax.random.uniform(kb1, (hidden_dim,),
                            minval=-1.0 / math.sqrt(input_dim),
                            maxval=1.0 / math.sqrt(input_dim))
    w2 = jax.random.uniform(kw2, (output_dim, hidden_dim), minval=0.0, maxval=1.0)
    b2 = jax.random.uniform(kb2, (output_dim,),
                            minval=-1.0 / math.sqrt(hidden_dim),
                            maxval=1.0 / math.sqrt(hidden_dim))

    # Aligned node count (16) plus a ragged one (10) to exercise the partial-block path.
    for n_nodes, kk in ((16, kx), (10, kx2)):
        x = jax.random.normal(kk, (n_nodes, input_dim), dtype=jnp.float32)
        out = jax.block_until_ready(nodewise_feedforward(x, w1, b1, w2, b2))
        ref = _reference(x, w1, b1, w2, b2)
        assert out.shape == (n_nodes, output_dim)
        # bf16 MXU inputs with f32 accumulation -> compare at bf16-level tolerance.
        assert jnp.allclose(out, ref, rtol=2e-2, atol=2e-2), f"mismatch vs reference (n={n_nodes})"

    print("KERNEL_OK")
</pallas_src>

<mosaic_0001>
module attributes {stable_mosaic.version = 11 : i64} {
  func.func @_ffn_kernel(%arg0: i32, %arg1: memref<16x16xf32, #tpu.memory_space<vmem>>, %arg2: memref<16x32xbf16, #tpu.memory_space<vmem>>, %arg3: memref<1x32xf32, #tpu.memory_space<vmem>>, %arg4: memref<32x16xbf16, #tpu.memory_space<vmem>>, %arg5: memref<1x16xf32, #tpu.memory_space<vmem>>, %arg6: memref<16x16xf32, #tpu.memory_space<vmem>>) attributes {dimension_semantics = [#tpu.dimension_semantics<parallel>], iteration_bounds = array<i64: 1>, scalar_prefetch = 0 : i64, scratch_operands = 0 : i64, tpu.core_type = #tpu.core_type<tc>, window_params = [{transform_indices = @transform_0, window_bounds = array<i64: 16, 16>}, {pipeline_mode = #tpu.pipeline_mode<synchronous>, transform_indices = @transform_1, window_bounds = array<i64: 16, 32>}, {pipeline_mode = #tpu.pipeline_mode<synchronous>, transform_indices = @transform_2, window_bounds = array<i64: 1, 32>}, {pipeline_mode = #tpu.pipeline_mode<synchronous>, transform_indices = @transform_3, window_bounds = array<i64: 32, 16>}, {pipeline_mode = #tpu.pipeline_mode<synchronous>, transform_indices = @transform_4, window_bounds = array<i64: 1, 16>}, {transform_indices = @transform_5, window_bounds = array<i64: 16, 16>}]} {
    %c0 = arith.constant 0 : index
    %c0_0 = arith.constant 0 : index
    %0 = vector.load %arg1[%c0, %c0_0] : memref<16x16xf32, #tpu.memory_space<vmem>>, vector<16x16xf32>
    %1 = arith.truncf %0 : vector<16x16xf32> to vector<16x16xbf16>
    %c0_1 = arith.constant 0 : index
    %c0_2 = arith.constant 0 : index
    %2 = vector.load %arg2[%c0_1, %c0_2] : memref<16x32xbf16, #tpu.memory_space<vmem>>, vector<16x32xbf16>
    %cst = arith.constant dense<0.000000e+00> : vector<16x32xf32>
    %3 = tpu.matmul %1, %2, %cst {dimension_numbers = #tpu.dot_dimension_numbers<[1], [0], [0], [1], [0, 0, 1, 1], [], []>} : vector<16x16xbf16>, vector<16x32xbf16>, vector<16x32xf32> -> vector<16x32xf32>
    %c0_3 = arith.constant 0 : index
    %c0_4 = arith.constant 0 : index
    %4 = vector.load %arg3[%c0_3, %c0_4] : memref<1x32xf32, #tpu.memory_space<vmem>>, vector<1x32xf32>
    %5 = vector.broadcast %4 : vector<1x32xf32> to vector<16x32xf32>
    %6 = arith.addf %3, %5 : vector<16x32xf32>
    %cst_5 = arith.constant 0.000000e+00 : f32
    %7 = vector.broadcast %cst_5 : f32 to vector<16x32xf32>
    %8 = arith.maximumf %6, %7 : vector<16x32xf32>
    %9 = arith.truncf %8 : vector<16x32xf32> to vector<16x32xbf16>
    %c0_6 = arith.constant 0 : index
    %c0_7 = arith.constant 0 : index
    %10 = vector.load %arg4[%c0_6, %c0_7] : memref<32x16xbf16, #tpu.memory_space<vmem>>, vector<32x16xbf16>
    %cst_8 = arith.constant dense<0.000000e+00> : vector<16x16xf32>
    %11 = tpu.matmul %9, %10, %cst_8 {dimension_numbers = #tpu.dot_dimension_numbers<[1], [0], [0], [1], [0, 0, 1, 1], [], []>} : vector<16x32xbf16>, vector<32x16xbf16>, vector<16x16xf32> -> vector<16x16xf32>
    %c0_9 = arith.constant 0 : index
    %c0_10 = arith.constant 0 : index
    %12 = vector.load %arg5[%c0_9, %c0_10] : memref<1x16xf32, #tpu.memory_space<vmem>>, vector<1x16xf32>
    %13 = vector.broadcast %12 : vector<1x16xf32> to vector<16x16xf32>
    %14 = arith.addf %11, %13 : vector<16x16xf32>
    %c0_11 = arith.constant 0 : index
    %c0_12 = arith.constant 0 : index
    %15 = vector.load %arg6[%c0_11, %c0_12] : memref<16x16xf32, #tpu.memory_space<vmem>>, vector<16x16xf32>
    tpu.vector_store %arg6[%c0_11, %c0_12], %14 {strides = array<i32>} : memref<16x16xf32, #tpu.memory_space<vmem>>, vector<16x16xf32>,
    return
  }
  func.func @transform_0(%arg0: i32) -> (i32, i32) {
    %c0_i32 = arith.constant 0 : i32
    %c0_i32_0 = arith.constant 0 : i32
    return %arg0, %c0_i32 : i32, i32
  }
  func.func @transform_1(%arg0: i32) -> (i32, i32) {
    %c0_i32 = arith.constant 0 : i32
    %c0_i32_0 = arith.constant 0 : i32
    %c0_i32_1 = arith.constant 0 : i32
    return %c0_i32, %c0_i32_0 : i32, i32
  }
  func.func @transform_2(%arg0: i32) -> (i32, i32) {
    %c0_i32 = arith.constant 0 : i32
    %c0_i32_0 = arith.constant 0 : i32
    %c0_i32_1 = arith.constant 0 : i32
    return %c0_i32, %c0_i32_0 : i32, i32
  }
  func.func @transform_3(%arg0: i32) -> (i32, i32) {
    %c0_i32 = arith.constant 0 : i32
    %c0_i32_0 = arith.constant 0 : i32
    %c0_i32_1 = arith.constant 0 : i32
    return %c0_i32, %c0_i32_0 : i32, i32
  }
  func.func @transform_4(%arg0: i32) -> (i32, i32) {
    %c0_i32 = arith.constant 0 : i32
    %c0_i32_0 = arith.constant 0 : i32
    %c0_i32_1 = arith.constant 0 : i32
    return %c0_i32, %c0_i32_0 : i32, i32
  }
  func.func @transform_5(%arg0: i32) -> (i32, i32) {
    %c0_i32 = arith.constant 0 : i32
    %c0_i32_0 = arith.constant 0 : i32
    return %arg0, %c0_i32 : i32, i32
  }
}

</mosaic_0001>

<bundles_post_ra>
// kernel: tpu_custom_call.1
= control target key start
LH: loop header
LB: loop body
LE: loop exit
PB: predicated region body
PF: predicated region fallthrough
CT: control target
= control target key end

     0   :  { %v232_v1 = vmov 0.0   ;;  %vm40_vm0 = vcmask 130048   ;;  %vm233_vm1 = vmmov 0   ;;  %s303_s0 = inlined_call_operand.vmem [shape: f32[16,16], index: 0, kind: input, shape index: {}]   ;;  %s304_s1 = inlined_call_operand.vmem [shape: bf16[16,32], index: 1, kind: input, shape index: {}]   ;;  %s305_s2 = inlined_call_operand.vmem [shape: f32[1,32], index: 2, kind: input, shape index: {}]   ;;  %s306_s3 = inlined_call_operand.vmem [shape: bf16[32,16], index: 3, kind: input, shape index: {}]   ;;  %s307_s4 = inlined_call_operand.vmem [shape: f32[1,16], index: 4, kind: input, shape index: {}]   ;;  %s308_s5 = inlined_call_operand.hbm [shape: f32[16,16], index: 5, kind: output, shape index: {}]  }
   0x1   :  { %v205_v0 = vld [vmem:[%s304_s1] sm:$0xff]   ;;  %186 = vmatprep.subr.bf16.mxu0 %v232_v1  ;;  %v23_v3 = vld [vmem:[%s303_s0 + $0x8] sm:$0xff]  ;;  %192 = vmatprep.subr.bf16.mxu1 %v232_v1 }
   0x2   :  { %v22_v2 = vld [vmem:[%s303_s0] sm:$0xff]  ;;  %187 = vmatpush3.bf16.msra.mxu0 %v205_v0  ;;  %188 = vmatprep.mubr.msk.bf16.mxu0 %vm233_vm1, %v232_v1 }
   0x3   :  { %v24_v4 = vpack.c.bf16 %v23_v3, %v22_v2  ;;  %196 = vmatprep.mubr.msk.bf16.mxu1 %vm233_vm1, %v232_v1 }
   0x4   :  { %10 = vsyncpa [#allocation3], 0  ;;  %v206_v5 = vld [vmem:[%s306_s3] sm:$0xff]   ;;  %v207_v6 = vld [vmem:[%s306_s3 + $0x8] sm:$0xff]   ;;  %vm111_vm2 = vcmask 261120   ;;  %s234_s3 = smov [#allocation2]  }
   0x5   :  { %189 = vmatmul.mubr.msk.bf16.vlgmr.msra.gmra.mrb[0].mxu0 %vm40_vm0, %v24_v4  ;;  %193 = vmatpush3.bf16.msra.mxu1 %v206_v5  ;;  %v174_v7 = vld [vmem:[%s305_s2] ss:$0 sm:$0xff]  ;;  %s163_s30 = sshll.u32 %s234_s3, 4  ;;  %s164_s30 = int_to_ptr.vmem [resolvable:$true] %s163_s30 }
   0x6   :  { %194 = vmatprep.subr.bf16.mxu1 %v232_v1  ;;  %v177_v17 = vld [vmem:[%s307_s4] ss:$0 sm:$0xff]  ;;  %s208_s2 = scalar_lea.vmem %s164_s30, 256  ;;  %p213_p1 = scmp.lt.s32.totalorder %s164_s30, %s164_s30 }
   0x7   :  { %p209_p0 = scmp.ne.s32.totalorder %s164_s30, %s208_s2  ;;  %p214_p2 = scmp.lt.s32.totalorder %s208_s2, %s208_s2 }
   0x9   :  { %195 = vmatpush3.bf16.msra.mxu1 %v207_v6  ;;  %p215_p3 = por %p214_p2, %p213_p1 }
   0xb   :  { %p216_p4 = pnand %p215_p3, %p209_p0 }
  0xd8   :  { %v78_v8 = vpop.f32.mrb[0].mxu0 }
  0xd9   :  { %v79_v9 = vadd.f32 %v174_v7, %v78_v8  ;;  %v190_v10 = vpop.f32.mrb[1].mxu0 }
  0xda   :  { %v81_v11 = vpop.f32.mrb[2].mxu0 }
  0xdb   :  { %v82_v12 = vadd.f32 %v174_v7, %v81_v11  ;;  %v191_v13 = vpop.f32.mrb[3].mxu0  ;;  %v85_v14 = vmax.f32 %v79_v9, 0.0 }
  0xdd   :  { %v86_v15 = vmax.f32 %v82_v12, 0.0 }
  0xdf   :  { %v87_v16 = vpack.c.bf16 %v86_v15, %v85_v14 }
  0xe1   :  { %197 = vmatmul.mubr.msk.bf16.vlgmr.msra.gmra.mrb[0].mxu1 %vm111_vm2, %v87_v16 }
 0x1b4   :  { %v149_v18 = vpop.f32.mrb[0].mxu1 }
 0x1b5   :  { %v150_v19 = vadd.f32 %v177_v17, %v149_v18  ;;  %v198_v20 = vpop.f32.mrb[1].mxu1 }
 0x1b6   :  { %v152_v21 = vpop.f32.mrb[2].mxu1 }
 0x1b7   :  { %156 = vst.msk [vmem:[#allocation2] sm:$0xff] %vm40_vm0, %v150_v19  ;;  %v153_v22 = vadd.f32 %v177_v17, %v152_v21  ;;  %v199_v23 = vpop.f32.mrb[3].mxu1 }
 0x1b9   :  { %157 = vst.msk [vmem:[#allocation2 + $0x8] sm:$0xff] %vm40_vm0, %v153_v22 }
 0x1ba   :  { %219 = shalt.err (!%p216_p4)
}
 0x1bb   :  { %s220_s7 = scalar_lea.hbm %s308_s5, 256 }
 0x1bc   :  { %p221_p5 = scmp.ne.s32.totalorder %s308_s5, %s220_s7  ;;  %p224_p6 = scmp.lt.u32.totalorder %s220_s7, %s308_s5 }
 0x1be   :  { %p226_p7 = pnand %p224_p6, %p221_p5 }
 0x1c0   :  { %229 = shalt.err (!%p226_p7)
}
 0x1c1   :  { %s235_s12 = smov 128   ;;  %s236_s13 = smov 8  }
 0x1c2   :  { %169 = dma.vmem_to_hbm [thread:$0]  %s164_s30, 256, %s308_s5, [#allocation3], %s235_s12, %s235_s12, %s236_s13  }
 0x1c3   :  { %230 = dma.done.wait [#allocation3], 256  }
 0x1c4   :  { %231 = vsyncadd [#allocation3], 4294967040 }
 0x1c5   :  { %173 = vsyncpa [#allocation3], 1 }

</bundles_post_ra>
